<compile_context>
chip_gen: v7x
topology: tpu7x:2x2x1
jax: 0.10.0
libtpu: 0.0.40
codegen_flags: <defaults>
</compile_context>

<pallas_src>
import functools

import jax
import jax.numpy as jnp
from jax.experimental import pallas as pl
from jax.experimental.pallas import tpu as pltpu


def _round_up(x, m):
    return ((x + m - 1) // m) * m


def attention_gate_kernel(x_ref, ge_ref, wxt_ref, bx_ref, wpt_ref, bphi_ref,
                          out_ref, *, regions, x_channels):
    """Fused conv_x (1x1) + g_emb add + relu + conv_phi (1x1) + sigmoid + gate.

    All blocks are channel-major: rows = channels (sublanes), cols = pixels
    (lanes), so every load/store is lane-dense.
    """
    # Resident weight/bias tiles (constant index_map -> DMA'd once).
    wxt = wxt_ref[...]            # (Cint, Cx)
    bx = bx_ref[...]              # (Cint, 1)
    wpt = wpt_ref[...]            # (regions, Cint)
    bphi = bphi_ref[...]          # (regions, 1)

    x = x_ref[...].astype(jnp.float32)         # (Cx,   tile_hw)
    g_emb = ge_ref[...].astype(jnp.float32)    # (Cint, tile_hw)

    x_emb = jnp.dot(wxt, x, preferred_element_type=jnp.float32) + bx
    h = jnp.maximum(x_emb + g_emb, 0.0)                          # relu
    phi = jnp.dot(wpt, h, preferred_element_type=jnp.float32) + bphi
    alpha = jax.nn.sigmoid(phi)                                  # (regions, tile_hw)

    if regions == 1:
        out_ref[...] = (x * alpha).astype(out_ref.dtype)
    else:
        # Write each gated slice directly into its output rows (static slices,
        # lane axis dense); avoids a sublane-merging reshape/concat.
        for r in range(regions):
            out_ref[r * x_channels:(r + 1) * x_channels, :] = (
                x * alpha[r:r + 1, :]).astype(out_ref.dtype)


def attention_gate_2d(x, g, params, *, regions=1, tile_hw=2048):
    """x: (N, Cx, H, W), g: (N, Cg, Hg, Wg), NCHW (PyTorch convention)."""
    wx, bx, wg, bg, wphi, bphi = params
    N, Cx, H, W = x.shape
    Cint = wx.shape[1]
    out_c = regions * Cx

    # F.interpolate(g, size=(H, W), mode='trilinear', align_corners=False):
    # TODO(synk): PyTorch 'trilinear' on 4-D input is invalid; the 2-D intent
    # is bilinear with half-pixel centers (align_corners=False), which is
    # exactly jax.image.resize(method='bilinear').
    #
    # conv_g is a 1x1 (linear) conv and bilinear-resize weights sum to 1, so
    # conv_g(resize(g)) + bg == resize(conv_g(g) + bg): apply the conv on the
    # low-res g and resize the Cint-channel embedding instead of raw g.
    g_emb_low = jnp.einsum('nchw,cd->ndhw', g, wg) + bg.reshape(1, -1, 1, 1)
    g_emb = jax.image.resize(g_emb_low, (N, Cint, H, W), method='bilinear')

    # Channel-major flattening: pure reshapes, no transpose / extra HBM pass.
    HW = H * W
    x3 = x.reshape(N, Cx, HW)
    ge3 = g_emb.reshape(N, Cint, HW).astype(x.dtype)

    # Lane-dense pixel tile (multiple of 128); pad the pixel axis if needed.
    tile = _round_up(min(tile_hw, _round_up(HW, 128)), 128)
    HW_pad = _round_up(HW, tile)
    if HW_pad != HW:
        pad = HW_pad - HW
        x3 = jnp.pad(x3, ((0, 0), (0, 0), (0, pad)))
        ge3 = jnp.pad(ge3, ((0, 0), (0, 0), (0, pad)))

    # Kernel-side weights, transposed so the matmul is (Cout, Cin) @ (Cin, P).
    wxt = jnp.transpose(wx).astype(jnp.float32)     # (Cint, Cx)
    bx_col = bx.reshape(Cint, 1).astype(jnp.float32)
    wpt = jnp.transpose(wphi).astype(jnp.float32)   # (regions, Cint)
    bphi_col = bphi.reshape(regions, 1).astype(jnp.float32)

    kernel = functools.partial(attention_gate_kernel,
                               regions=regions, x_channels=Cx)

    out3 = pl.pallas_call(
        kernel,
        out_shape=jax.ShapeDtypeStruct((N, out_c, HW_pad), x.dtype),
        grid_spec=pltpu.PrefetchScalarGridSpec(
            num_scalar_prefetch=0,
            grid=(N, HW_pad // tile),
            in_specs=[
                pl.BlockSpec((None, Cx, tile), lambda n, i: (n, 0, i)),    # x
                pl.BlockSpec((None, Cint, tile), lambda n, i: (n, 0, i)),  # g_emb
                pl.BlockSpec((Cint, Cx), lambda n, i: (0, 0)),             # conv_x W^T
                pl.BlockSpec((Cint, 1), lambda n, i: (0, 0)),              # conv_x b
                pl.BlockSpec((regions, Cint), lambda n, i: (0, 0)),        # conv_phi W^T
                pl.BlockSpec((regions, 1), lambda n, i: (0, 0)),           # conv_phi b
            ],
            out_specs=pl.BlockSpec((None, out_c, tile), lambda n, i: (n, 0, i)),
        ),
        compiler_params=pltpu.CompilerParams(
            dimension_semantics=("parallel", "parallel")),
    )(x3, ge3, wxt, bx_col, wpt, bphi_col)

    if HW_pad != HW:
        out3 = out3[..., :HW]
    # TODO(synk): the module's attention=True variant would also return alpha.
    return out3.reshape(N, out_c, H, W)


def reference(x, g, params, regions=1):
    """Pure-JAX NCHW reference mirroring the PyTorch forward."""
    wx, bx, wg, bg, wphi, bphi = params
    N, Cx, H, W = x.shape
    g_rs = jax.image.resize(g, (N, g.shape[1], H, W), method='bilinear')
    x_emb = jnp.einsum('nchw,cd->ndhw', x, wx) + bx.reshape(1, -1, 1, 1)
    g_emb = jnp.einsum('nchw,cd->ndhw', g_rs, wg) + bg.reshape(1, -1, 1, 1)
    h = jax.nn.relu(x_emb + g_emb)
    phi = jnp.einsum('nchw,cd->ndhw', h, wphi) + bphi.reshape(1, -1, 1, 1)
    alpha = jax.nn.sigmoid(phi)
    if regions > 1:
        return jnp.concatenate([x * alpha[:, r:r + 1] for r in range(regions)],
                               axis=1)
    return x * alpha


if __name__ == "__main__":
    # Small shapes consistent with the module:
    #   x_features=4, g_features=6, int_features=8
    #   x: (2, 4, 16, 16), g: (2, 6, 8, 8) -> g path upsampled to 16x16
    N, Cx, Cg, Cint = 2, 4, 6, 8
    H = W = 16
    Hg = Wg = 8

    key = jax.random.PRNGKey(0)
    kx, kg, k1, k2, k3, k4 = jax.random.split(key, 6)

    x = jax.random.normal(kx, (N, Cx, H, W), dtype=jnp.float32)
    g = jax.random.normal(kg, (N, Cg, Hg, Wg), dtype=jnp.float32)

    # PyTorch conv weight (out, in, 1, 1) stored as (in, out) so the 1x1 conv
    # is a plain channel matmul.
    wx = 0.1 * jax.random.normal(k1, (Cx, Cint), dtype=jnp.float32)
    bx = 0.1 * jax.random.normal(k2, (1, Cint), dtype=jnp.float32)
    wg = 0.1 * jax.random.normal(k3, (Cg, Cint), dtype=jnp.float32)
    bg = 0.1 * jax.random.normal(k4, (1, Cint), dtype=jnp.float32)

    for regions in (1, 2):
        k5, k6 = jax.random.split(jax.random.fold_in(key, regions))
        wphi = 0.1 * jax.random.normal(k5, (Cint, regions), dtype=jnp.float32)
        bphi = 0.1 * jax.random.normal(k6, (1, regions), dtype=jnp.float32)
        params = (wx, bx, wg, bg, wphi, bphi)

        out = jax.block_until_ready(
            attention_gate_2d(x, g, params, regions=regions, tile_hw=2048))
        ref = jax.block_until_ready(reference(x, g, params, regions=regions))

        assert out.shape == (N, regions * Cx, H, W), out.shape
        err = float(jnp.max(jnp.abs(out - ref)))
        assert err < 1e-4, err

    print("KERNEL_OK")
</pallas_src>

<mosaic_0001>
module attributes {stable_mosaic.version = 11 : i64} {
  func.func @attention_gate_kernel(%arg0: i32, %arg1: i32, %arg2: memref<1x4x256xf32, #tpu.memory_space<vmem>>, %arg3: memref<1x8x256xf32, #tpu.memory_space<vmem>>, %arg4: memref<8x4xf32, #tpu.memory_space<vmem>>, %arg5: memref<8x1xf32, #tpu.memory_space<vmem>>, %arg6: memref<1x8xf32, #tpu.memory_space<vmem>>, %arg7: memref<1x1xf32, #tpu.memory_space<vmem>>, %arg8: memref<1x4x256xf32, #tpu.memory_space<vmem>>) attributes {dimension_semantics = [#tpu.dimension_semantics<parallel>, #tpu.dimension_semantics<parallel>], iteration_bounds = array<i64: 2, 1>, scalar_prefetch = 0 : i64, scratch_operands = 0 : i64, tpu.core_type = #tpu.core_type<tc>, window_params = [{transform_indices = @transform_0, window_bounds = array<i64: 1, 4, 256>}, {transform_indices = @transform_1, window_bounds = array<i64: 1, 8, 256>}, {pipeline_mode = #tpu.pipeline_mode<synchronous>, transform_indices = @transform_2, window_bounds = array<i64: 8, 4>}, {pipeline_mode = #tpu.pipeline_mode<synchronous>, transform_indices = @transform_3, window_bounds = array<i64: 8, 1>}, {pipeline_mode = #tpu.pipeline_mode<synchronous>, transform_indices = @transform_4, window_bounds = array<i64: 1, 8>}, {pipeline_mode = #tpu.pipeline_mode<synchronous>, transform_indices = @transform_5, window_bounds = array<i64: 1, 1>}, {transform_indices = @transform_6, window_bounds = array<i64: 1, 4, 256>}]} {
    %c0 = arith.constant 0 : index
    %c0_0 = arith.constant 0 : index
    %0 = vector.load %arg4[%c0, %c0_0] : memref<8x4xf32, #tpu.memory_space<vmem>>, vector<8x4xf32>
    %c0_1 = arith.constant 0 : index
    %c0_2 = arith.constant 0 : index
    %1 = vector.load %arg5[%c0_1, %c0_2] : memref<8x1xf32, #tpu.memory_space<vmem>>, vector<8x1xf32>
    %c0_3 = arith.constant 0 : index
    %c0_4 = arith.constant 0 : index
    %2 = vector.load %arg6[%c0_3, %c0_4] : memref<1x8xf32, #tpu.memory_space<vmem>>, vector<1x8xf32>
    %c0_5 = arith.constant 0 : index
    %c0_6 = arith.constant 0 : index
    %3 = vector.load %arg7[%c0_5, %c0_6] : memref<1x1xf32, #tpu.memory_space<vmem>>, vector<1x1xf32>
    %c0_7 = arith.constant 0 : index
    %c0_8 = arith.constant 0 : index
    %c0_9 = arith.constant 0 : index
    %4 = vector.load %arg2[%c0_7, %c0_8, %c0_9] : memref<1x4x256xf32, #tpu.memory_space<vmem>>, vector<1x4x256xf32>
    %5 = vector.shape_cast %4 : vector<1x4x256xf32> to vector<4x256xf32>
    %c0_10 = arith.constant 0 : index
    %c0_11 = arith.constant 0 : index
    %c0_12 = arith.constant 0 : index
    %6 = vector.load %arg3[%c0_10, %c0_11, %c0_12] : memref<1x8x256xf32, #tpu.memory_space<vmem>>, vector<1x8x256xf32>
    %7 = vector.shape_cast %6 : vector<1x8x256xf32> to vector<8x256xf32>
    %cst = arith.constant dense<0.000000e+00> : vector<8x256xf32>
    %8 = tpu.matmul %0, %5, %cst {dimension_numbers = #tpu.dot_dimension_numbers<[1], [0], [0], [1], [0, 0, 1, 1], [], []>} : vector<8x4xf32>, vector<4x256xf32>, vector<8x256xf32> -> vector<8x256xf32>
    %9 = vector.broadcast %1 : vector<8x1xf32> to vector<8x256xf32>
    %10 = arith.addf %8, %9 : vector<8x256xf32>
    %11 = arith.addf %10, %7 : vector<8x256xf32>
    %cst_13 = arith.constant 0.000000e+00 : f32
    %12 = vector.broadcast %cst_13 : f32 to vector<8x256xf32>
    %13 = arith.maximumf %11, %12 : vector<8x256xf32>
    %cst_14 = arith.constant dense<0.000000e+00> : vector<1x256xf32>
    %14 = tpu.matmul %2, %13, %cst_14 {dimension_numbers = #tpu.dot_dimension_numbers<[1], [0], [0], [1], [0, 0, 1, 1], [], []>} : vector<1x8xf32>, vector<8x256xf32>, vector<1x256xf32> -> vector<1x256xf32>
    %15 = vector.broadcast %3 : vector<1x1xf32> to vector<1x256xf32>
    %16 = arith.addf %14, %15 : vector<1x256xf32>
    %17 = arith.negf %16 : vector<1x256xf32>
    %18 = math.exp %17 : vector<1x256xf32>
    %cst_15 = arith.constant 1.000000e+00 : f32
    %19 = vector.broadcast %cst_15 : f32 to vector<1x256xf32>
    %20 = arith.addf %19, %18 : vector<1x256xf32>
    %21 = arith.divf %19, %20 : vector<1x256xf32>
    %22 = vector.broadcast %21 : vector<1x256xf32> to vector<4x256xf32>
    %23 = arith.mulf %5, %22 : vector<4x256xf32>
    %c0_16 = arith.constant 0 : index
    %c0_17 = arith.constant 0 : index
    %c0_18 = arith.constant 0 : index
    %24 = vector.load %arg8[%c0_16, %c0_17, %c0_18] : memref<1x4x256xf32, #tpu.memory_space<vmem>>, vector<1x4x256xf32>
    %25 = vector.shape_cast %24 : vector<1x4x256xf32> to vector<4x256xf32>
    %26 = vector.shape_cast %23 : vector<4x256xf32> to vector<1x4x256xf32>
    tpu.vector_store %arg8[%c0_16, %c0_17, %c0_18], %26 {strides = array<i32>} : memref<1x4x256xf32, #tpu.memory_space<vmem>>, vector<1x4x256xf32>,
    return
  }
  func.func @transform_0(%arg0: i32, %arg1: i32) -> (i32, i32, i32) {
    %c0_i32 = arith.constant 0 : i32
    %c0_i32_0 = arith.constant 0 : i32
    return %arg0, %c0_i32, %arg1 : i32, i32, i32
  }
  func.func @transform_1(%arg0: i32, %arg1: i32) -> (i32, i32, i32) {
    %c0_i32 = arith.constant 0 : i32
    %c0_i32_0 = arith.constant 0 : i32
    return %arg0, %c0_i32, %arg1 : i32, i32, i32
  }
  func.func @transform_2(%arg0: i32, %arg1: i32) -> (i32, i32) {
    %c0_i32 = arith.constant 0 : i32
    %c0_i32_0 = arith.constant 0 : i32
    %c0_i32_1 = arith.constant 0 : i32
    return %c0_i32, %c0_i32_0 : i32, i32
  }
  func.func @transform_3(%arg0: i32, %arg1: i32) -> (i32, i32) {
    %c0_i32 = arith.constant 0 : i32
    %c0_i32_0 = arith.constant 0 : i32
    %c0_i32_1 = arith.constant 0 : i32
    return %c0_i32, %c0_i32_0 : i32, i32
  }
  func.func @transform_4(%arg0: i32, %arg1: i32) -> (i32, i32) {
    %c0_i32 = arith.constant 0 : i32
    %c0_i32_0 = arith.constant 0 : i32
    %c0_i32_1 = arith.constant 0 : i32
    return %c0_i32, %c0_i32_0 : i32, i32
  }
  func.func @transform_5(%arg0: i32, %arg1: i32) -> (i32, i32) {
    %c0_i32 = arith.constant 0 : i32
    %c0_i32_0 = arith.constant 0 : i32
    %c0_i32_1 = arith.constant 0 : i32
    return %c0_i32, %c0_i32_0 : i32, i32
  }
  func.func @transform_6(%arg0: i32, %arg1: i32) -> (i32, i32, i32) {
    %c0_i32 = arith.constant 0 : i32
    %c0_i32_0 = arith.constant 0 : i32
    return %arg0, %c0_i32, %arg1 : i32, i32, i32
  }
}

</mosaic_0001>

<bundles_post_ra>
// kernel: tpu_custom_call.1
= control target key start
LH: loop header
LB: loop body
LE: loop exit
PB: predicated region body
PF: predicated region fallthrough
CT: control target
= control target key end

     0   :  { %s1096_s0 = inlined_call_operand.vmem [shape: f32[2,4,256], index: 0, kind: input, shape index: {}]   ;;  %s1097_s1 = inlined_call_operand.hbm [shape: f32[2,8,256], index: 1, kind: input, shape index: {}]   ;;  %s1098_s2 = inlined_call_operand.vmem [shape: f32[8,4], index: 2, kind: input, shape index: {}]   ;;  %s1099_s3 = inlined_call_operand.vmem [shape: f32[8,1], index: 3, kind: input, shape index: {}]   ;;  %s1100_s4 = inlined_call_operand.vmem [shape: f32[1,8], index: 4, kind: input, shape index: {}]   ;;  %s1101_s5 = inlined_call_operand.<no memory space> [shape: f32[1,1], index: 5, kind: input, shape index: {}]   ;;  %s1102_s6 = inlined_call_operand.hbm [shape: f32[2,4,256], index: 6, kind: output, shape index: {}]  }
   0x1   :  { %v11_v0 = vstv %s1101_s5 }
   0x2   :  { %12 = vst [vmem:[#allocation2] sm:$0x1] %v11_v0 }
   0x3   :  { %13 = vsyncpa [#allocation4], 0 }
   0x4   :  { %15 = vsyncpa [#allocation4 + $0x1], 0 }
   0x5   :  { %16 = vsyncpa [#allocation5], 0 }
   0x6   :  { %18 = vsyncpa [#allocation5 + $0x1], 0  ;;  %s909_s23 = smov 0   ;;  %s911_s24 = smov 0  }
   0x7   :  { %s913_s25 = smov 0   ;;  %s915_s26 = smov 0  }
   0x8   :  { %s917_s27 = smov 0   ;;  %s919_s28 = smov 0  }
   0x9 LB: > { %s653_s5 = sadd.s32 4294967295, %s865_s28   ;;  %s654_s29 = sadd.s32 4294967294, %s865_s28   ;;  %s865_s28 = sphi %s919_s28, %s24_s28   ;;  %s861_s27 = sphi %s917_s27, %s1118_s27   ;;  %s857_s26 = sphi %s915_s26, %s1117_s26   ;;  %s853_s25 = sphi %s913_s25, %s1116_s25   ;;  %s849_s24 = sphi %s911_s24, %s1115_s24   ;;  %s845_s23 = sphi %s909_s23, %s1114_s23  }
   0xa   : > { %s36_s30 = sadd.s32 1, %s861_s27  ;;  %s73_s7 = sadd.s32 1, %s853_s25 }
   0xb   : > { %p38_p0 = scmp.ge.s32.totalorder %s36_s30, 2  ;;  %p80_p1 = scmp.ne.s32.totalorder %s853_s25, %s849_s24 }
   0xc   : > { %p81_p2 = scmp.eq.s32.totalorder %s865_s28, 0  ;;  %p86_p3 = scmp.ne.s32.totalorder %s849_s24, %s845_s23 }
   0xd   : > { %s1120_s30 = smov (%p38_p0, %s36_s30), 0  ;;  %p87_p5 = scmp.eq.s32.totalorder %s653_s5, 0 }
   0xe   : > { %p950_p4 = por %p81_p2, %p80_p1  ;;  %s68_s9 = ssub.s32 %s861_s27, %s1120_s30 }
   0xf   : > { %p196_p6 = scmp.eq.s32.totalorder %s653_s5, 1  ;;  %p71_p7 = scmp.eq.s32.totalorder %s68_s9, 0 }
  0x10   : > { %p956_p8 = por %p87_p5, %p86_p3  ;;  %p202_p10 = scmp.eq.s32.totalorder %s654_s29, 1 }
  0x11   : > { %p960_p9 = por %p196_p6, %p80_p1  ;;  %p691_p13 = scmp.lt.s32.totalorder %s865_s28, 2 }
  0x12   : > { %s965_s12 = scalar_select %p71_p7, %s853_s25, %s73_s7  }
  0x13   : > { %s1106_s11 = scalar_select %p960_p9, 1, 0 }
  0x14   : > { %p967_p11 = por %p202_p10, %p86_p3  ;;  %s247_s14 = sand.u32 1, %s853_s25  }
  0x15   : > { %s657_s15 = sshll.u32 %s247_s14, 4  ;;  %s676_s16 = sshll.u32 %s861_s27, 8 }
  0x16   : > { %s1107_s13 = scalar_select %p967_p11, 1, 0 }
  0x17   : > { %s978_s19 = scalar_lea.hbm %s1097_s1, %s676_s16  ;;  %s251_s20 = scalar_lea.vmem [#allocation3], %s657_s15 }
  0x18   : > { %s261_s21 = sshll.u32 %s251_s20, 4  ;;  %p984_p0 = pnand %p691_p13, %p950_p4  ;;  %s980_s21 = int_to_ptr.vmem [resolvable:$true] %s261_s21 }
  0x19   : > { %s248_s5 = scalar_lea.sflag [#allocation4], %s247_s14  ;;  %s753_s29 = scalar_lea.hbm %s978_s19, 256 }
  0x1a   : > { %p754_p3 = scmp.ne.s32.totalorder %s978_s19, %s753_s29  ;;  %p755_p5 = pneg %p984_p0 }
  0x1b   : > { %s758_s8 = scalar_lea.hbm %s1097_s1, 512  ;;  %p759_p4 = scmp.lt.u32.totalorder %s978_s19, %s1097_s1 }
  0x1c   : > { %p756_p6 = pnand %p755_p5, %p754_p3  ;;  %p760_p10 = scmp.lt.u32.totalorder %s758_s8, %s753_s29 }
  0x1d   : > { %p762_p12 = scmp.lt.u32.totalorder %s753_s29, %s978_s19 }
  0x1e   : > { %p757_p7 = pneg %p756_p6  ;;  %p761_p13 = por %p760_p10, %p759_p4 }
  0x20   : > { %p763_p1 = por %p762_p12, %p761_p13 }
  0x22   : > { %p764_p2 = pnand %p763_p1, %p757_p7 }
  0x24   : > { %767 = shalt.err (!%p764_p2)
}
  0x25   : > { %s768_s14 = scalar_lea.vmem %s980_s21, 256  ;;  %s867_s17 = smov [#allocation3]  }
  0x26   : > { %p769_p3 = scmp.ne.s32.totalorder %s980_s21, %s768_s14  ;;  %s773_s18 = sshll.u32 %s867_s17, 4  ;;  %s774_s18 = int_to_ptr.vmem [resolvable:$false] %s773_s18 }
  0x27   : > { %s775_s20 = scalar_lea.vmem %s774_s18, 512  ;;  %p776_p9 = scmp.lt.s32.totalorder %s980_s21, %s774_s18 }
  0x28   : > { %p771_p6 = pnand %p769_p3, %p755_p5  ;;  %p777_p4 = scmp.lt.s32.totalorder %s775_s20, %s768_s14 }
  0x2a   : > { %p772_p11 = pneg %p771_p6  ;;  %p778_p10 = por %p777_p4, %p776_p9 }
  0x2c   : > { %p779_p12 = pnand %p778_p10, %p772_p11 }
  0x2e   : > { %782 = shalt.err (!%p779_p12)
}
  0x2f   : > { %686 = dma.hbm_to_vmem [thread:$0]  (!%p984_p0), %s978_s19, 256, %s980_s21, %s248_s5  }
  0x30   : > { %p1109_p1 = scmp.lt.s32.totalorder %s865_s28, 3  ;;  %p1110_p2 = scmp.ge.s32.totalorder %s865_s28, 1 }
  0x32   : > { %p267_p5 = pnand %p1110_p2, %p1109_p1 }
  0x33   : > { %s1020_s29 = sand.u32 (!%p267_p5), 1, %s849_s24  }
  0x34   : > { %270 = sbr.rel (%p267_p5) target bundleno = 553 (0x229), region = 44  ;;  %s661_s7 = sshll.u32 (!%p267_p5), %s1020_s29, 4 }
  0x35   : > { %s273_s9 = scalar_lea.sflag (!%p267_p5), [#allocation4], %s1020_s29  ;;  %s276_s8 = scalar_lea.vmem (!%p267_p5), [#allocation3], %s661_s7 }
  0x3b   : > { %836 = dma.done.wait (%p956_p8), %s273_s9, 256  }
  0x3c   : > { %838 = vsyncadd (%p956_p8), %s273_s9, 4294967040  ;;  %p315_p9 = scmp.lt.s32.totalorder %s857_s26, 1  ;;  %v868_v1 = vmov 0.0   ;;  %v869_v2 = vmov 0   ;;  %vm344_vm0 = vcmask 1043456   ;;  %v327_v4 = vld [vmem:[%s1099_s3] sm:$0xff]  ;;  %v429_v20 = vlaneseq }
  0x3d   : > { %413 = vmatprep.mubr.f32.mxu0 %v868_v1  ;;  %743 = vset.pattern.permute.xlu0 %v869_v2  ;;  %v326_v6 = vld [vmem:[%s1098_s2] sm:$0xff]  ;;  %vm340_vm1 = vcmask 31744   ;;  %vm433_vm2 = vcmask 64512   ;;  %s662_s7 = sshll.u32 %s1020_s29, 3  ;;  %s678_s9 = sshll.u32 %s857_s26, 7 }
  0x3e   : > { %s316_s19 = scalar_select %p315_p9, %s857_s26, 1  ;;  %501 = vmatprep.mubr.f32.mxu1 %v868_v1  ;;  %335 = vperm.xlu0 %743, %v327_v4   ;;  %v329_v7 = vld [vmem:[#allocation2] sm:$0x1]  ;;  %v331_v10 = vld [vmem:[%s276_s8] sm:$0xff]  ;;  %v430_v21 = vshrl.u32 %v429_v20, 7 }
  0x3f   : > { %v332_v13 = vld [vmem:[%s276_s8 + $0x8] sm:$0xff]  ;;  %s313_s8 = scalar_lea.vmem [#allocation6], %s662_s7  ;;  %s1047_s5 = scalar_lea.hbm %s1102_s6, %s678_s9 }
  0x40   : > { %s677_s21 = sshll.u32 %s316_s19, 3  ;;  %v328_v19 = vld [vmem:[%s1100_s4] sm:$0x1]  ;;  %v431_v22 = vsub.s32 0, %v430_v21  ;;  %s551_s19 = sshll.u32 %s313_s8, 4  ;;  %s1049_s19 = int_to_ptr.vmem [resolvable:$true] %s551_s19 }
  0x41   : > { %s322_s15 = scalar_lea.vmem %s1096_s0, %s677_s21  ;;  %s783_s16 = scalar_lea.vmem %s1049_s19, 128 }
  0x42   : > { %v330_v3 = vld [vmem:[%s322_s15] sm:$0xff]  ;;  %426 = vperm.xlu0 %743, %v329_v7   ;;  %s535_s15 = scalar_lea.sflag [#allocation5], %s1020_s29  ;;  %p784_p8 = scmp.ne.s32.totalorder %s1049_s19, %s783_s16 }
  0x43   : > { %v339_v5 = vcombine.high %v330_v3, %v330_v3  ;;  %p1111_p11 = scmp.ne.s32.totalorder %s1106_s11, 0  ;;  %s870_s26 = smov [#allocation6]  }
  0x44   : > { %s787_s14 = sshll.u32 %s870_s26, 4  ;;  %s788_s14 = int_to_ptr.vmem [resolvable:$false] %s787_s14 }
  0x45   : > { %665 = vmatprep.subr.msk.mxu0 %vm344_vm0, %v339_v5  ;;  %p785_p0 = pnand %p784_p8, %p1111_p11  ;;  %s789_s10 = scalar_lea.vmem %s788_s14, 256 }
  0x46   : > { %666 = vmatpush1.msk.msra.mxu0 %vm344_vm0, %v330_v3  ;;  %p790_p13 = scmp.lt.s32.totalorder %s1049_s19, %s788_s14  ;;  %p791_p3 = scmp.lt.s32.totalorder %s789_s10, %s783_s16 }
  0x47   : > { %667 = vmatmul.mubr.msk.f32.vlgmr.msra.gmra.mrb[0].mxu0 %vm340_vm1, %v326_v6  ;;  %p786_p7 = pneg %p785_p0 }
  0x48   : > { %p792_p6 = por %p791_p3, %p790_p13 }
  0x4a   : > { %p793_p4 = pnand %p792_p6, %p786_p7 }
  0xbd   : > { %v336_v8 = vpop.permute.xlu0 %335 }
  0xc1   : > { %v427_v23 = vpop.permute.xlu0 %426 }
  0xc2   : > { %v432_v24 = vrot.slane %v427_v23, %v431_v22 }
 0x11a   : > { %v415_v9 = vpop.f32.mrb[0].mxu0 }
 0x11b   : > { %v416_v11 = vadd.f32 %v415_v9, %v336_v8  ;;  %v417_v12 = vpop.f32.mrb[1].mxu0 }
 0x11c   : > { %v418_v14 = vadd.f32 %v417_v12, %v336_v8 }
 0x11d   : > { %v420_v15 = vadd.f32 %v416_v11, %v331_v10 }
 0x11e   : > { %v421_v16 = vadd.f32 %v418_v14, %v332_v13 }
 0x11f   : > { %v422_v18 = vmax.f32 %v420_v15, 0.0 }
 0x120   : > { %v423_v17 = vmax.f32 %v421_v16, 0.0 }
 0x122   : > { %437 = vmatprep.subr.mxu1 %v423_v17 }
 0x123   : > { %438 = vmatpush1.msra.mxu1 %v422_v18 }
 0x124   : > { %668 = vmatmul.mubr.msk.f32.vlgmr.msra.gmra.mrb[0].mxu1 %vm433_vm2, %v328_v19 }
 0x1f7   : > { %v503_v25 = vpop.f32.mrb[0].mxu1 }
 0x1f8   : > { %v504_v26 = vadd.f32 %v503_v25, %v432_v24  ;;  %v505_v27 = vpop.f32.mrb[1].mxu1 }
 0x1f9   : > { %v506_v28 = vadd.f32 %v505_v27, %v432_v24 }
 0x1fa   : > { %v669_v29 = vmul.f32 -1.442695, %v504_v26 }
 0x1fb   : > { %v670_v30 = vmul.f32 -1.442695, %v506_v28 }
 0x1fc   : > { %745 = vpow2.f32 %v669_v29 }
 0x1fd   : > { %747 = vpow2.f32 %v670_v30 }
 0x206   : > { %v746_v31 = vpop.eup %745 }
 0x207   : > { %v748_v32 = vpop.eup %747  ;;  %v514_v33 = vadd.f32 1.0, %v746_v31 }
 0x208   : > { %v515_v34 = vadd.f32 1.0, %v748_v32 }
 0x209   : > { %749 = vrcp.f32 %v514_v33 }
 0x20a   : > { %751 = vrcp.f32 %v515_v34 }
 0x213   : > { %v750_v35 = vpop.eup %749 }
 0x214   : > { %v752_v36 = vpop.eup %751  ;;  %v523_v37 = vrot.slane %v750_v35, %v431_v22 }
 0x215   : > { %v527_v38 = vrot.slane %v752_v36, %v431_v22 }
 0x217   : > { %v530_v39 = vcombine.low %v523_v37, %v527_v38 }
 0x219   : > { %v532_v40 = vmul.f32 %v530_v39, %v330_v3 }
 0x21b   : > { %533 = vst [vmem:[%s313_s8] sm:$0xff] %v532_v40 }
 0x21c   : > { %796 = shalt.err (!%p793_p4)
}
 0x21d   : > { %s797_s29 = scalar_lea.hbm %s1047_s5, 128  ;;  %s801_s20 = scalar_lea.hbm %s1102_s6, 256 }
 0x21e   : > { %p798_p10 = scmp.ne.s32.totalorder %s1047_s5, %s797_s29  ;;  %p802_p2 = scmp.lt.u32.totalorder %s1047_s5, %s1102_s6 }
 0x21f   : > { %p803_p5 = scmp.lt.u32.totalorder %s801_s20, %s797_s29  ;;  %p805_p8 = scmp.lt.u32.totalorder %s797_s29, %s1047_s5 }
 0x220   : > { %p799_p12 = pnand %p798_p10, %p1111_p11 }
 0x221   : > { %p804_p9 = por %p803_p5, %p802_p2 }
 0x222   : > { %p800_p1 = pneg %p799_p12 }
 0x223   : > { %p806_p0 = por %p805_p8, %p804_p9 }
 0x225   : > { %p807_p7 = pnand %p806_p0, %p800_p1 }
 0x227   : > { %810 = shalt.err (!%p807_p7)
}
 0x228   : > { %681 = dma.vmem_to_hbm [thread:$0]  (%p1111_p11), %s1049_s19, 128, %s1047_s5, %s535_s15  }
 0x229 PF: > { %s563_s8 = sand.u32 1, %s845_s23   ;;  %p1112_p13 = scmp.ne.s32.totalorder %s1107_s13, 0 }
 0x22a   : > { %p1113_p3 = scmp.ge.s32.totalorder %s865_s28, 2  ;;  %s564_s21 = scalar_lea.sflag [#allocation5], %s563_s8 }
 0x22c   : > { %p688_p6 = pnand %p1113_p3, %p1112_p13 }
 0x22e   : > { %840 = dma.done.wait (!%p688_p6), %s564_s21, 128  }
 0x22f   : > { %842 = vsyncadd (!%p688_p6), %s564_s21, 4294967168  ;;  %s24_s28 = sadd.s32 1, %s865_s28   ;;  %s1114_s23 = smov %s849_s24 }
 0x230   : > { %p21_p4 = scmp.ge.s32.totalorder %s24_s28, 4   ;;  %s1115_s24 = smov %s853_s25 }
 0x231   : > { %s1116_s25 = smov %s965_s12  ;;  %s1117_s26 = smov %s861_s27 }
 0x232   : > { %s1118_s27 = smov %s1120_s30  ;;  %23 = sbr.rel (!%p21_p4) target bundleno = 9 (0x9), region = 92 }
 0x239   :  { %569 = vsyncpa [#allocation4], 1 }
 0x23a   :  { %571 = vsyncpa [#allocation4 + $0x1], 1 }
 0x23b   :  { %572 = vsyncpa [#allocation5], 1 }
 0x23c   :  { %574 = vsyncpa [#allocation5 + $0x1], 1 }

</bundles_post_ra>
